<compile_context>
chip_gen: v7x
topology: tpu7x:2x2x1
jax: 0.10.0
libtpu: 0.0.40
codegen_flags: <defaults>
</compile_context>

<pallas_src>
import math

import jax
import jax.numpy as jnp
from jax.experimental import pallas as pl
from jax.experimental.pallas import tpu as pltpu


def _fourier_projection(period, seq_len, n_harmonics):
    """Orthogonal projector onto the Fourier basis span for one period ([L, L])."""
    x = jnp.arange(1, seq_len + 1, dtype=jnp.float32)
    cols = [jnp.ones_like(x)]
    for d in range(1, n_harmonics + 1):
        w = d * 2.0 * math.pi / period
        cols.append(jnp.cos(w * x))
        cols.append(jnp.sin(w * x))
    phi = jnp.stack(cols, axis=1)               # [L, K]
    return phi @ jnp.linalg.pinv(phi)           # [L, L] symmetric projector


def _fold_projections(proj_mats, w_last):
    """Fold the residual chain + last linear channel into per-node [L, P+1].

    proj_mats: [N, P, L, L]  projection matrices in processing order
    w_last:    [L]           last row of the nn.Linear weight
    returns    [N, L, P+1]   so that out[n, b, :] = x[n, b, :] @ V[n] + b_last
    """
    _, P, L, _ = proj_mats.shape
    eye = jnp.eye(L, dtype=jnp.float32)

    def per_node(mats):
        cols = []
        chain = eye                              # prod_{q<p} (I - M_q)
        for p in range(P):                       # static, small P
            m = mats[p]
            cols.append(chain @ (m @ w_last))    # pattern p -> last channel
            chain = chain @ (eye - m)
        cols.append(chain @ w_last)              # residual -> last channel
        return jnp.stack(cols, axis=1)           # [L, P+1]

    return jax.vmap(per_node)(proj_mats)         # [N, L, P+1]


def _freq_kernel(x_ref, v_ref, b_ref, o_ref):
    # x_ref: [NB, B, L]  node-chunk of series
    # v_ref: [NB, L, K]  folded per-node matrices (K = P+1)
    # b_ref: [1, 1]      scalar bias (last bias element), SMEM
    # o_ref: [NB, B, K]
    out = jnp.einsum('nbl,nlk->nbk', x_ref[...], v_ref[...],
                     preferred_element_type=jnp.float32)
    o_ref[...] = out + b_ref[0, 0]


def frequency_net_forward(x, proj_mats, weight, bias):
    """x: [B, N, L]; proj_mats: [N, P, L, L]; weight: [O, L]; bias: [O] -> [B, N, P+1]."""
    B, N, L = x.shape
    P = proj_mats.shape[1]
    K = P + 1

    # Only the last linear output channel is ever used by the module.
    w_last = weight[-1, :].astype(jnp.float32)                     # [L]
    b_last = bias[-1].astype(jnp.float32).reshape(1, 1)            # [1, 1]

    v = _fold_projections(proj_mats.astype(jnp.float32), w_last)   # [N, L, K]
    x_nbl = jnp.transpose(x, (1, 0, 2)).astype(jnp.float32)        # [N, B, L]

    # Two parallel node-chunks when possible (v7x megacore); otherwise one
    # single step -- at these shapes grid-step overhead dominates everything.
    num_chunks = 2 if (N % 2 == 0 and N >= 2) else 1
    nb = N // num_chunks

    out = pl.pallas_call(
        _freq_kernel,
        out_shape=jax.ShapeDtypeStruct((N, B, K), jnp.float32),
        grid_spec=pltpu.PrefetchScalarGridSpec(
            num_scalar_prefetch=0,
            grid=(num_chunks,),
            in_specs=[
                pl.BlockSpec((nb, B, L), lambda i: (i, 0, 0)),
                pl.BlockSpec((nb, L, K), lambda i: (i, 0, 0)),
                pl.BlockSpec(memory_space=pltpu.MemorySpace.SMEM),
            ],
            out_specs=pl.BlockSpec((nb, B, K), lambda i: (i, 0, 0)),
        ),
        compiler_params=pltpu.CompilerParams(
            dimension_semantics=("parallel",)),
    )(x_nbl, v, b_last)

    return jnp.transpose(out, (1, 0, 2))                           # [B, N, P+1]


def _reference(x, proj_mats, weight, bias):
    """Un-folded pure-JAX reference (sequential projection + residual chain)."""
    _, N, _ = x.shape
    P = proj_mats.shape[1]
    w_last = weight[-1, :].astype(jnp.float32)
    b_last = bias[-1].astype(jnp.float32)
    outs = []
    for n in range(N):
        r = x[:, n, :].astype(jnp.float32)
        cols = []
        for p in range(P):
            yfit = r @ proj_mats[n, p]
            cols.append(yfit @ w_last + b_last)
            r = r - yfit
        cols.append(r @ w_last + b_last)
        outs.append(jnp.stack(cols, axis=1))     # [B, P+1]
    return jnp.stack(outs, axis=1)               # [B, N, P+1]


if __name__ == "__main__":
    # Small shapes consistent with the module's forward:
    # batch B=8, nodes N=4, seq_channels L=16, out_channels O=8, P=3 periods/node.
    B, N, L, O, P = 8, 4, 16, 8, 3

    key = jax.random.PRNGKey(0)
    kx, kw, kb = jax.random.split(key, 3)
    x = jax.random.normal(kx, (B, N, L), dtype=jnp.float32)

    # Deterministic nn.Linear(L, O) init (uniform +- 1/sqrt(L), like PyTorch default).
    bound = 1.0 / math.sqrt(L)
    weight = jax.random.uniform(kw, (O, L), minval=-bound, maxval=bound, dtype=jnp.float32)
    bias = jax.random.uniform(kb, (O,), minval=-bound, maxval=bound, dtype=jnp.float32)

    # adj_period: per-node list of P periods.  Frequency_enhanced processes
    # them in REVERSED order; we bake that order into the projection stack.
    adj_period = [[16.0, 8.0, 4.0],
                  [12.0, 6.0, 3.0],
                  [16.0, 8.0, 4.0],
                  [10.0, 5.0, 2.5]]
    harmonics = [2, 2, 1]   # harmonics per processing slot

    proj = []
    for n in range(N):
        mats = []
        for slot, per in enumerate(reversed(adj_period[n])):
            mats.append(_fourier_projection(per, L, harmonics[slot]))
        proj.append(jnp.stack(mats, axis=0))
    proj_mats = jnp.stack(proj, axis=0)         # [N, P, L, L]

    out = frequency_net_forward(x, proj_mats, weight, bias)
    jax.block_until_ready(out)
    assert out.shape == (B, N, P + 1), out.shape
    assert out.dtype == jnp.float32

    # Correctness: folded kernel vs. un-folded sequential reference.
    ref = _reference(x, proj_mats, weight, bias)
    err = float(jnp.max(jnp.abs(out - ref)))
    assert err < 5e-2, f"max abs error {err}"

    print("KERNEL_OK")
</pallas_src>

<mosaic_0001>
module attributes {stable_mosaic.version = 11 : i64} {
  func.func @_freq_kernel(%arg0: i32, %arg1: memref<2x8x16xf32, #tpu.memory_space<vmem>>, %arg2: memref<2x16x4xf32, #tpu.memory_space<vmem>>, %arg3: memref<1x1xf32, #tpu.memory_space<smem>>, %arg4: memref<2x8x4xf32, #tpu.memory_space<vmem>>) attributes {dimension_semantics = [#tpu.dimension_semantics<parallel>], iteration_bounds = array<i64: 2>, scalar_prefetch = 0 : i64, scratch_operands = 0 : i64, tpu.core_type = #tpu.core_type<tc>, window_params = [{transform_indices = @transform_0, window_bounds = array<i64: 2, 8, 16>}, {transform_indices = @transform_1, window_bounds = array<i64: 2, 16, 4>}, {transform_indices = @transform_2, window_bounds = array<i64: 1, 1>}, {transform_indices = @transform_3, window_bounds = array<i64: 2, 8, 4>}]} {
    %c0 = arith.constant 0 : index
    %c0_0 = arith.constant 0 : index
    %c0_1 = arith.constant 0 : index
    %0 = vector.load %arg1[%c0, %c0_0, %c0_1] : memref<2x8x16xf32, #tpu.memory_space<vmem>>, vector<2x8x16xf32>
    %c0_2 = arith.constant 0 : index
    %c0_3 = arith.constant 0 : index
    %c0_4 = arith.constant 0 : index
    %1 = vector.load %arg2[%c0_2, %c0_3, %c0_4] : memref<2x16x4xf32, #tpu.memory_space<vmem>>, vector<2x16x4xf32>
    "tpu.trace_start"() <{level = 10 : i32, message = "nbl,nlk->nbk"}> : () -> ()
    %cst = arith.constant dense<0.000000e+00> : vector<2x8x4xf32>
    %2 = tpu.matmul %0, %1, %cst {dimension_numbers = #tpu.dot_dimension_numbers<[2], [1], [1], [2], [0, 0, 0, 1, 1, 2], [0], [0]>} : vector<2x8x16xf32>, vector<2x16x4xf32>, vector<2x8x4xf32> -> vector<2x8x4xf32>
    "tpu.trace_stop"() : () -> ()
    %c0_5 = arith.constant 0 : index
    %c0_6 = arith.constant 0 : index
    %3 = memref.load %arg3[%c0_5, %c0_6] : memref<1x1xf32, #tpu.memory_space<smem>>
    %4 = vector.broadcast %3 : f32 to vector<2x8x4xf32>
    %5 = arith.addf %2, %4 : vector<2x8x4xf32>
    %c0_7 = arith.constant 0 : index
    %c0_8 = arith.constant 0 : index
    %c0_9 = arith.constant 0 : index
    %6 = vector.load %arg4[%c0_7, %c0_8, %c0_9] : memref<2x8x4xf32, #tpu.memory_space<vmem>>, vector<2x8x4xf32>
    tpu.vector_store %arg4[%c0_7, %c0_8, %c0_9], %5 {strides = array<i32>} : memref<2x8x4xf32, #tpu.memory_space<vmem>>, vector<2x8x4xf32>,
    return
  }
  func.func @transform_0(%arg0: i32) -> (i32, i32, i32) {
    %c0_i32 = arith.constant 0 : i32
    %c0_i32_0 = arith.constant 0 : i32
    %c0_i32_1 = arith.constant 0 : i32
    return %arg0, %c0_i32, %c0_i32_0 : i32, i32, i32
  }
  func.func @transform_1(%arg0: i32) -> (i32, i32, i32) {
    %c0_i32 = arith.constant 0 : i32
    %c0_i32_0 = arith.constant 0 : i32
    %c0_i32_1 = arith.constant 0 : i32
    return %arg0, %c0_i32, %c0_i32_0 : i32, i32, i32
  }
  func.func @transform_2(%arg0: i32) -> (i32, i32) {
    %c0_i32 = arith.constant 0 : i32
    %c0_i32_0 = arith.constant 0 : i32
    %c0_i32_1 = arith.constant 0 : i32
    return %c0_i32, %c0_i32_0 : i32, i32
  }
  func.func @transform_3(%arg0: i32) -> (i32, i32, i32) {
    %c0_i32 = arith.constant 0 : i32
    %c0_i32_0 = arith.constant 0 : i32
    %c0_i32_1 = arith.constant 0 : i32
    return %arg0, %c0_i32, %c0_i32_0 : i32, i32, i32
  }
}

</mosaic_0001>

<bundles_post_ra>
// kernel: tpu_custom_call.1
= control target key start
LH: loop header
LB: loop body
LE: loop exit
PB: predicated region body
PF: predicated region fallthrough
CT: control target
= control target key end

     0   :  { %s514_s14 = smov 0   ;;  %s534_s0 = inlined_call_operand.vmem [shape: f32[4,8,16], index: 0, kind: input, shape index: {}]   ;;  %s535_s1 = inlined_call_operand.vmem [shape: f32[4,16,4], index: 1, kind: input, shape index: {}]   ;;  %s536_s2 = inlined_call_operand.<no memory space> [shape: f32[1,1], index: 2, kind: input, shape index: {}]   ;;  %s537_s3 = inlined_call_operand.vmem [shape: f32[4,8,4], index: 3, kind: output, shape index: {}]  }
   0x1   :  { %8 = sst [smem:[#allocation2]] %s536_s2 }
   0x2 LB: > { %s426_s15 = sadd.s32 4294967295, %s486_s14   ;;  %p430_p0 = scmp.ge.s32.totalorder %s486_s14, 1  ;;  %s486_s14 = sphi %s514_s14, %s14_s14  }
   0x3   : > { %p151_p1 = scmp.lt.s32.totalorder %s486_s14, 3 }
   0x5   : > { %p152_p2 = pnand %p430_p0, %p151_p1 }
   0x6   : > { %s431_s16 = sshll.u32 (!%p152_p2), %s426_s15, 1  ;;  %v488_v0 = vmov (!%p152_p2), 0.0|0.0   ;;  %vm489_vm0 = vmmov (!%p152_p2), 0   ;;  %v490_v1 = vmov (!%p152_p2), 0.0   ;;  %vm208_vm1 = vcmask (!%p152_p2), 130048   ;;  %s206_s24 = sld [smem:[#allocation2]] (!%p152_p2) }
   0x7   : > { %155 = sbr.rel (%p152_p2) target bundleno = 239 (0xef), region = 32  ;;  %463 = vmatprep.subr.bf16.mxu0 (!%p152_p2), %v488_v0  ;;  %466 = vmatprep.subr.bf16.mxu1 (!%p152_p2), %v488_v0  ;;  %p182_p3 = scmp.lt.s32.totalorder (!%p152_p2), %s431_s16, 3  ;;  %vm355_vm2 = vcmask (!%p152_p2), 31744  }
   0x8   : > { %453 = vmatprep.mubr.msk.f32.mxu0 (!%p152_p2), %vm489_vm0, %v490_v1  ;;  %460 = vmatprep.mubr.msk.f32.mxu1 (!%p152_p2), %vm489_vm0, %v490_v1 }
   0xc   : > { %v207_v10 = vstv (!%p152_p2), %s206_s24 }
   0xe   : > { %s539_s16 = smov (!%p182_p3, %s431_s16), 3 }
   0xf   : > { %s442_s2 = sshll.u32 %s539_s16, 4  ;;  %s432_s17 = sshll.u32 %s539_s16, 3 }
  0x10   : > { %s192_s20 = scalar_lea.vmem %s535_s1, %s442_s2  ;;  %s185_s23 = scalar_lea.vmem %s534_s0, %s432_s17 }
  0x11   : > { %v202_v2 = vld [vmem:[%s192_s20] sm:$0xff]  ;;  %v203_v3 = vld [vmem:[%s192_s20 + $0x8] sm:$0xff]  ;;  %v204_v4 = vld [vmem:[%s192_s20 + $0x10] sm:$0xff]  ;;  %s198_s27 = scalar_lea.vmem %s537_s3, %s432_s17 }
  0x12   : > { %v464_v5 = vpack.c.bf16 %v203_v3, %v202_v2  ;;  %v205_v6 = vld [vmem:[%s192_s20 + $0x18] sm:$0xff]  ;;  %v200_v8 = vld [vmem:[%s185_s23] sm:$0xff]  ;;  %v201_v9 = vld [vmem:[%s185_s23 + $0x8] sm:$0xff] }
  0x13   : > { %v467_v7 = vpack.c.bf16 %v205_v6, %v204_v4 }
  0x14   : > { %465 = vmatpush3.bf16.msra.mxu0 %v464_v5 }
  0x15   : > { %468 = vmatpush3.bf16.msra.mxu1 %v467_v7 }
  0x17   : > { %454 = vmatmul.mubr.msk.f32.vlgmr.msra.gmra.mrb[0].mxu0 %vm208_vm1, %v200_v8 }
  0x18   : > { %461 = vmatmul.mubr.msk.f32.vlgmr.msra.gmra.mrb[0].mxu1 %vm208_vm1, %v201_v9 }
  0xea   : > { %v278_v11 = vpop.f32.mrb[0].mxu0 }
  0xeb   : > { %v279_v12 = vadd.f32 %v278_v11, %v207_v10  ;;  %v351_v13 = vpop.f32.mrb[0].mxu1  ;;  %v455_v14 = vpop.f32.mrb[1].mxu0 }
  0xec   : > { %v352_v15 = vadd.f32 %v351_v13, %v207_v10  ;;  %v462_v16 = vpop.f32.mrb[1].mxu1 }
  0xed   : > { %356 = vst.msk [vmem:[%s198_s27] sm:$0xff] %vm355_vm2, %v279_v12 }
  0xee   : > { %357 = vst.msk [vmem:[%s198_s27 + $0x8] sm:$0xff] %vm355_vm2, %v352_v15 }
  0xef PF: > { %s14_s14 = sadd.s32 1, %s486_s14  }
  0xf0   : > { %p11_p4 = scmp.ge.s32.totalorder %s14_s14, 4  }
  0xf2   :  { %13 = sbr.rel (!%p11_p4) target bundleno = 2 (0x2), region = 65 }

</bundles_post_ra>
